<compile_context>
chip_gen: v6e
topology: v6e:2x2x1
jax: 0.10.0
libtpu: 0.0.40
codegen_flags: <defaults>
</compile_context>

<pallas_src>
import math
import functools

import jax
import jax.numpy as jnp
from jax.experimental import pallas as pl
from jax.experimental.pallas import tpu as pltpu


def _arc_margin_kernel(cos_ref, label_ref, out_ref, *, cos_m, sin_m, th, mm,
                       scale, easy_margin, tile_c):
    # Upcast (no-op for f32 input) so margin math is done in f32.
    cosine = cos_ref[...].astype(jnp.float32)                # (TB, TC)
    label = label_ref[...]                                   # (TB, 1) int32

    # 1 - c^2 <= 1 always, so only the lower clamp is needed.
    sine = jnp.sqrt(jnp.maximum(1.0 - cosine * cosine, 0.0))
    phi = cosine * cos_m - sine * sin_m
    if easy_margin:
        phi = jnp.where(cosine > 0.0, phi, cosine)
    else:
        phi = jnp.where(cosine > th, phi, cosine - mm)

    # Shift the tile origin onto the (TB,1) label column instead of the
    # (TB,TC) iota: one scalar-ish subtract per row, not one add per element.
    c0 = pl.program_id(1) * tile_c
    label_local = label - c0                                 # (TB, 1)
    class_ids = jax.lax.broadcasted_iota(jnp.int32, cosine.shape, 1)

    # Select-based blend (equivalent to one-hot scatter + mix), then scale.
    out = jnp.where(class_ids == label_local, phi, cosine) * scale
    out_ref[...] = out.astype(out_ref.dtype)


def _pick_tile(dim, target, align):
    """Largest legal tile <= target for this dim (full extent if dim <= target)."""
    if dim <= target:
        return dim                     # full-extent block: always legal
    t = (target // align) * align      # partial block: must be (8,128)-aligned
    return max(t, align)


def arc_margin_product(cosine, label, *, s=30.0, m=0.5, easy_margin=False,
                       tile_b=512, tile_c=2048, out_dtype=None,
                       donate_cosine=False):
    """cosine: [B, C] float (f32 or bf16), label: [B] int. Returns [B, C]."""
    B, C = cosine.shape
    cos_m = math.cos(m)
    sin_m = math.sin(m)
    th = math.cos(math.pi - m)
    mm = math.sin(math.pi - m) * m
    if isinstance(s, str) and s == "auto":
        scale = math.sqrt(2.0) * math.log(C - 1)
    else:
        scale = float(s)
    if out_dtype is None:
        out_dtype = cosine.dtype

    # Sublane alignment follows the input dtype packing (8 for f32, 16 for bf16).
    align_b = 16 if cosine.dtype == jnp.bfloat16 else 8
    tb = _pick_tile(B, tile_b, align_b)
    tc = _pick_tile(C, tile_c, 128)

    # v7x has 2 TensorCores: a 1x1 grid leaves one idle. If everything fits in
    # a single tile, force a split along C (preferred; keeps lanes dense) or B.
    if pl.cdiv(B, tb) * pl.cdiv(C, tc) == 1:
        if C >= 2 * 128:
            tc = ((pl.cdiv(C, 2) + 127) // 128) * 128
        elif B >= 2 * align_b:
            tb = ((pl.cdiv(B, 2) + align_b - 1) // align_b) * align_b

    grid = (pl.cdiv(B, tb), pl.cdiv(C, tc))

    label2d = label.astype(jnp.int32).reshape(B, 1)

    kernel = functools.partial(
        _arc_margin_kernel,
        cos_m=cos_m, sin_m=sin_m, th=th, mm=mm,
        scale=scale, easy_margin=easy_margin, tile_c=tc,
    )

    extra_kwargs = {}
    if donate_cosine and out_dtype == cosine.dtype:
        # Output reuses cosine's HBM buffer. NOTE: alias index {0: 0} is only
        # valid while num_scalar_prefetch == 0.
        extra_kwargs["input_output_aliases"] = {0: 0}

    return pl.pallas_call(
        kernel,
        out_shape=jax.ShapeDtypeStruct((B, C), out_dtype),
        grid_spec=pltpu.PrefetchScalarGridSpec(
            num_scalar_prefetch=0,
            grid=grid,
            in_specs=[
                pl.BlockSpec((tb, tc), lambda i, j: (i, j)),   # cosine tile
                pl.BlockSpec((tb, 1), lambda i, j: (i, 0)),    # label column
            ],
            out_specs=pl.BlockSpec((tb, tc), lambda i, j: (i, j)),
        ),
        compiler_params=pltpu.CompilerParams(
            dimension_semantics=("parallel", "parallel"),
            vmem_limit_bytes=48 << 20,
        ),
        **extra_kwargs,
    )(cosine, label2d)


def _reference(cosine, label, *, s=30.0, m=0.5, easy_margin=False):
    cosine = cosine.astype(jnp.float32)
    cos_m, sin_m = math.cos(m), math.sin(m)
    th = math.cos(math.pi - m)
    mm = math.sin(math.pi - m) * m
    sine = jnp.sqrt(jnp.clip(1.0 - cosine ** 2, 0.0, 1.0))
    phi = cosine * cos_m - sine * sin_m
    if easy_margin:
        phi = jnp.where(cosine > 0, phi, cosine)
    else:
        phi = jnp.where(cosine > th, phi, cosine - mm)
    one_hot = jax.nn.one_hot(label, cosine.shape[1], dtype=cosine.dtype)
    out = one_hot * phi + (1.0 - one_hot) * cosine
    return out * s


def _run_case(key, B, C, *, easy_margin, tile_b=512, tile_c=2048,
              out_dtype=None, atol=1e-5, rtol=1e-5):
    k1, k2 = jax.random.split(key)
    cosine = jax.random.uniform(k1, (B, C), dtype=jnp.float32,
                                minval=-1.0, maxval=1.0)
    label = jax.random.randint(k2, (B,), 0, C, dtype=jnp.int32)

    out = arc_margin_product(cosine, label, s=30.0, m=0.5,
                             easy_margin=easy_margin,
                             tile_b=tile_b, tile_c=tile_c,
                             out_dtype=out_dtype)
    out = jax.block_until_ready(out)
    ref = _reference(cosine, label, s=30.0, m=0.5, easy_margin=easy_margin)
    expect_dtype = cosine.dtype if out_dtype is None else out_dtype
    assert out.shape == (B, C) and out.dtype == expect_dtype
    assert jnp.allclose(out.astype(jnp.float32), ref, atol=atol, rtol=rtol), \
        f"mismatch vs reference for shape ({B}, {C}), dtype {expect_dtype}"


if __name__ == "__main__":
    key = jax.random.PRNGKey(0)
    k_a, k_b, k_c, k_d = jax.random.split(key, 4)

    # Small aligned shape — single B tile, single (small) C tile.
    _run_case(k_a, 8, 128, easy_margin=False)

    # Multi-tile case (forced small tiles) with a non-multiple-of-128 C to
    # exercise the label-offset shift and the ragged last C-tile.
    _run_case(k_b, 16, 300, easy_margin=True, tile_b=8, tile_c=128)

    # Would-be 1x1 grid at default tiles: exercises the forced C split
    # (keeps both v7x TensorCores busy on realistic single-tile shapes).
    _run_case(k_c, 16, 512, easy_margin=False)

    # bf16 output path (halved write stream); looser tolerance for bf16 store.
    _run_case(k_d, 16, 256, easy_margin=False, out_dtype=jnp.bfloat16,
              atol=0.2, rtol=1e-2)

    print("KERNEL_OK")
</pallas_src>

<mosaic_0001>
module attributes {stable_mosaic.version = 11 : i64} {
  func.func @_arc_margin_kernel(%arg0: i32, %arg1: i32, %arg2: memref<8x128xf32, #tpu.memory_space<vmem>>, %arg3: memref<8x1xi32, #tpu.memory_space<vmem>>, %arg4: memref<8x128xf32, #tpu.memory_space<vmem>>) attributes {dimension_semantics = [#tpu.dimension_semantics<parallel>, #tpu.dimension_semantics<parallel>], iteration_bounds = array<i64: 1, 1>, scalar_prefetch = 0 : i64, scratch_operands = 0 : i64, tpu.core_type = #tpu.core_type<tc>, window_params = [{transform_indices = @transform_0, window_bounds = array<i64: 8, 128>}, {transform_indices = @transform_1, window_bounds = array<i64: 8, 1>}, {transform_indices = @transform_2, window_bounds = array<i64: 8, 128>}]} {
    %c0 = arith.constant 0 : index
    %c0_0 = arith.constant 0 : index
    %0 = vector.load %arg2[%c0, %c0_0] : memref<8x128xf32, #tpu.memory_space<vmem>>, vector<8x128xf32>
    %c0_1 = arith.constant 0 : index
    %c0_2 = arith.constant 0 : index
    %1 = vector.load %arg3[%c0_1, %c0_2] : memref<8x1xi32, #tpu.memory_space<vmem>>, vector<8x1xi32>
    %2 = arith.mulf %0, %0 : vector<8x128xf32>
    %cst = arith.constant 1.000000e+00 : f32
    %3 = vector.broadcast %cst : f32 to vector<8x128xf32>
    %4 = arith.subf %3, %2 : vector<8x128xf32>
    %cst_3 = arith.constant 0.000000e+00 : f32
    %5 = vector.broadcast %cst_3 : f32 to vector<8x128xf32>
    %6 = arith.maximumf %4, %5 : vector<8x128xf32>
    %7 = math.sqrt %6 : vector<8x128xf32>
    %cst_4 = arith.constant 0.87758255 : f32
    %8 = vector.broadcast %cst_4 : f32 to vector<8x128xf32>
    %9 = arith.mulf %0, %8 : vector<8x128xf32>
    %cst_5 = arith.constant 0.47942555 : f32
    %10 = vector.broadcast %cst_5 : f32 to vector<8x128xf32>
    %11 = arith.mulf %7, %10 : vector<8x128xf32>
    %12 = arith.subf %9, %11 : vector<8x128xf32>
    %cst_6 = arith.constant -0.87758255 : f32
    %13 = vector.broadcast %cst_6 : f32 to vector<8x128xf32>
    %14 = arith.cmpf ogt, %0, %13 : vector<8x128xf32>
    %cst_7 = arith.constant 0.239712775 : f32
    %15 = vector.broadcast %cst_7 : f32 to vector<8x128xf32>
    %16 = arith.subf %0, %15 : vector<8x128xf32>
    %17 = arith.select %14, %12, %16 : vector<8x128xi1>, vector<8x128xf32>
    %c128_i32 = arith.constant 128 : i32
    %18 = arith.muli %arg1, %c128_i32 : i32
    %19 = vector.broadcast %18 : i32 to vector<8x1xi32>
    %20 = arith.subi %1, %19 : vector<8x1xi32>
    %21 = tpu.iota {dimensions = array<i32: 1>} : vector<8x128xi32>
    %22 = vector.broadcast %20 : vector<8x1xi32> to vector<8x128xi32>
    %23 = arith.cmpi eq, %21, %22 : vector<8x128xi32>
    %24 = arith.select %23, %17, %0 : vector<8x128xi1>, vector<8x128xf32>
    %cst_8 = arith.constant 3.000000e+01 : f32
    %25 = vector.broadcast %cst_8 : f32 to vector<8x128xf32>
    %26 = arith.mulf %24, %25 : vector<8x128xf32>
    %c0_9 = arith.constant 0 : index
    %c0_10 = arith.constant 0 : index
    %27 = vector.load %arg4[%c0_9, %c0_10] : memref<8x128xf32, #tpu.memory_space<vmem>>, vector<8x128xf32>
    tpu.vector_store %arg4[%c0_9, %c0_10], %26 {strides = array<i32>} : memref<8x128xf32, #tpu.memory_space<vmem>>, vector<8x128xf32>,
    return
  }
  func.func @transform_0(%arg0: i32, %arg1: i32) -> (i32, i32) {
    %c0_i32 = arith.constant 0 : i32
    return %arg0, %arg1 : i32, i32
  }
  func.func @transform_1(%arg0: i32, %arg1: i32) -> (i32, i32) {
    %c0_i32 = arith.constant 0 : i32
    %c0_i32_0 = arith.constant 0 : i32
    return %arg0, %c0_i32 : i32, i32
  }
  func.func @transform_2(%arg0: i32, %arg1: i32) -> (i32, i32) {
    %c0_i32 = arith.constant 0 : i32
    return %arg0, %arg1 : i32, i32
  }
}

</mosaic_0001>

<bundles_post_ra>
// kernel: tpu_custom_call.1
= control target key start
LH: loop header
LB: loop body
LE: loop exit
PB: predicated region body
PF: predicated region fallthrough
CT: control target
= control target key end

     0   :  { %s110_s0 = inlined_call_operand.vmem [shape: f32[8,128], index: 0, kind: input, shape index: {}]   ;;  %s111_s1 = inlined_call_operand.vmem [shape: s32[8,1], index: 1, kind: input, shape index: {}]   ;;  %s112_s2 = inlined_call_operand.hbm [shape: f32[8,128], index: 2, kind: output, shape index: {}]  }
   0x1   :  { %v13_v0 = vld [vmem:[%s111_s1] sm:$0xff] }
   0x2   :  { %7 = vsyncpa [#allocation3], 0  ;;  %v84_v1 = vmov 0   ;;  %v12_v2 = vld [vmem:[%s110_s0] sm:$0xff]  ;;  %v33_v13 = vlaneseq  ;;  %s85_s0 = smov [#allocation2]  }
   0x3   :  { %59 = vset.pattern.permute.xlu0 %v84_v1  ;;  %v14_v3 = vmul.f32 %v12_v2, %v12_v2  ;;  %v24_v11 = vmul.f32 0.87758255, %v12_v2  ;;  %v56_v15 = vadd.f32 -0.23971277, %v12_v2  ;;  %vm27_vm2 = vcmp.gt.f32.partialorder %v12_v2, -0.87758255 }
   0x4   :  { %36 = vperm.xlu0 %59, %v13_v0   ;;  %v34_v16 = vand.u32 127, %v33_v13  ;;  %s48_s1 = sshll.u32 %s85_s0, 4  ;;  %s49_s1 = int_to_ptr.vmem [resolvable:$true] %s48_s1 }
   0x5   :  { %v15_v4 = vsub.f32 1.0, %v14_v3  ;;  %s62_s13 = scalar_lea.vmem %s49_s1, 128  ;;  %p67_p1 = scmp.lt.s32.totalorder %s49_s1, %s49_s1 }
   0x6   :  { %p63_p0 = scmp.ne.s32.totalorder %s49_s1, %s62_s13  ;;  %p68_p2 = scmp.lt.s32.totalorder %s62_s13, %s62_s13 }
   0x7   :  { %v16_v5 = vmax.f32 %v15_v4, 0.0 }
   0x8   :  { %p69_p3 = por %p68_p2, %p67_p1 }
   0x9   :  { %60 = vrsqrt.f32 %v16_v5  ;;  %vm19_vm0 = vcmp.eq.f32.partialorder %v16_v5, inf  ;;  %v22_v8 = vand.u32 2147483648, %v16_v5  ;;  %vm21_vm1 = vcmp.eq.f32.partialorder %v16_v5, 0.0 }
   0xa   :  { %p70_p4 = pnand %p69_p3, %p63_p0 }
  0x16   :  { %v61_v6 = vpop.eup %60 }
  0x17   :  { %v18_v7 = vmul.f32 %v61_v6, %v16_v5 }
  0x19   :  { %v20_v9 = vsel %vm19_vm0, %v16_v5, %v18_v7 }
  0x1a   :  { %v23_v10 = vsel %vm21_vm1, %v22_v8, %v20_v9 }
  0x1b   :  { %v25_v12 = vmul.f32 0.47942555, %v23_v10 }
  0x1d   :  { %v26_v14 = vsub.f32 %v24_v11, %v25_v12 }
  0x1f   :  { %v29_v17 = vsel %vm27_vm2, %v26_v14, %v56_v15 }
  0x7f   :  { %v37_v18 = vpop.permute.xlu0 %36 }
  0x80   :  { %vm38_vm3 = vcmp.eq.s32.totalorder %v34_v16, %v37_v18 }
  0x81   :  { %v39_v19 = vsel %vm38_vm3, %v29_v17, %v12_v2 }
  0x82   :  { %v40_v20 = vmul.f32 30.0, %v39_v19 }
  0x84   :  { %41 = vst [vmem:[#allocation2] sm:$0xff] %v40_v20 }
  0x85   :  { %73 = shalt.err (!%p70_p4)
}
  0x86   :  { %51 = dma.vmem_to_hbm [thread:$0]  %s49_s1, 128, %s112_s2, [#allocation3]  }
  0x87   :  { %82 = dma.done.wait [#allocation3], 128  }
  0x88   :  { %83 = vsyncadd [#allocation3], 4294967168 }
  0x89   :  { %55 = vsyncpa [#allocation3], 1 }

</bundles_post_ra>
